<compile_context>
chip_gen: v7x
topology: tpu7x:2x2x1
jax: 0.10.0
libtpu: 0.0.40
codegen_flags: <defaults>
</compile_context>

<pallas_src>
import math

import jax
import jax.numpy as jnp
from jax.experimental import pallas as pl
from jax.experimental.pallas import tpu as pltpu

_INV_SQRT2 = 0.7071067811865476
_LANE = 128
_SUBLANE = 8


def _round_up(x, m):
    return ((x + m - 1) // m) * m


# --------------------------------------------------------------------------
# Kernel
# --------------------------------------------------------------------------
def _embedfc_kernel(x_ref, w1_ref, b1_ref, w2_ref, b2_ref, o_ref, g_ref):
    # j == 0: compute GELU(x @ w1 + b1) for this row tile once, stash bf16 in
    # VMEM scratch, reuse it for every output-column tile j.
    @pl.when(pl.program_id(1) == 0)
    def _():
        x = x_ref[...].astype(jnp.bfloat16)          # cast fused into kernel
        h = jnp.dot(x, w1_ref[...], preferred_element_type=jnp.float32)
        h = h + b1_ref[...]
        # Exact GELU (torch.nn.GELU default): 0.5*x*(1 + erf(x/sqrt(2)))
        g = 0.5 * h * (1.0 + jax.lax.erf(h * _INV_SQRT2))
        g_ref[...] = g.astype(jnp.bfloat16)

    y = jnp.dot(g_ref[...], w2_ref[...], preferred_element_type=jnp.float32)
    o_ref[...] = (y + b2_ref[...]).astype(o_ref.dtype)


# --------------------------------------------------------------------------
# One-time parameter preparation (hoisted out of the per-call path)
# --------------------------------------------------------------------------
def prepare_embedfc_params(w1, b1, w2, b2):
    """Pad/cast weights ONCE.

    w1: (input_dim, emb_dim)   [transposed vs torch's (out, in)]
    b1: (emb_dim,)
    w2: (emb_dim, emb_dim)
    b2: (emb_dim,)
    """
    input_dim, emb_dim = int(w1.shape[0]), int(w1.shape[1])
    emb_p = _round_up(emb_dim, _LANE)

    # w1 stays UNPADDED along K (input_dim); only lane (output) dims padded.
    w1_p = jnp.zeros((input_dim, emb_p), jnp.bfloat16)
    w1_p = w1_p.at[:, :emb_dim].set(w1.astype(jnp.bfloat16))
    w2_p = jnp.zeros((emb_p, emb_p), jnp.bfloat16)
    w2_p = w2_p.at[:emb_dim, :emb_dim].set(w2.astype(jnp.bfloat16))
    b1_p = jnp.zeros((1, emb_p), jnp.float32)
    b1_p = b1_p.at[0, :emb_dim].set(b1.astype(jnp.float32))
    b2_p = jnp.zeros((1, emb_p), jnp.float32)
    b2_p = b2_p.at[0, :emb_dim].set(b2.astype(jnp.float32))

    return dict(w1=w1_p, b1=b1_p, w2=w2_p, b2=b2_p,
                input_dim=input_dim, emb_dim=emb_dim, emb_p=emb_p)


# --------------------------------------------------------------------------
# Tiling heuristics (generation aware)
# --------------------------------------------------------------------------
def _vmem_capacity_bytes():
    try:
        return int(pltpu.get_tpu_info().vmem_capacity_bytes)
    except Exception:
        return 64 << 20   # conservative: v7x per-TC VMEM


def _pick_tile_e(emb_p, vmem_cap):
    """Output-column tile for w2. Keep w2 fully resident when it fits."""
    budget = vmem_cap // 4
    if emb_p * emb_p * 2 <= budget:          # bf16, single buffered
        return emb_p
    # Largest multiple-of-128 divisor of emb_p whose double-buffered bf16
    # block fits the budget.
    n_lanes = emb_p // _LANE
    for div in range(2, n_lanes + 1):
        if n_lanes % div == 0 and 2 * emb_p * (emb_p // div) * 2 <= budget:
            return emb_p // div
    return _LANE


def _pick_tile_n(n_rows, input_dim, emb_p, tile_e, x_itemsize, vmem_cap):
    per_row = (2 * input_dim * x_itemsize     # x tile, double buffered
               + 2 * tile_e * 4               # out tile, double buffered, f32
               + emb_p * 2                    # g scratch (bf16)
               + 2 * emb_p * 4)               # transient f32 h / g
    weight_floor = input_dim * emb_p * 2 + 2 * emb_p * tile_e * 2 + emb_p * 8
    budget = max(vmem_cap - weight_floor - (8 << 20), 4 << 20)
    tile_n = min(1024, (budget // per_row) // _SUBLANE * _SUBLANE)
    tile_n = max(_SUBLANE, min(tile_n, _round_up(max(n_rows, 1), _SUBLANE)))
    # Ensure >= 2 row steps when there is enough work, so both v7x TCs run.
    if n_rows > _SUBLANE and pl.cdiv(n_rows, tile_n) < 2:
        tile_n = max(_SUBLANE, _round_up(pl.cdiv(n_rows, 2), _SUBLANE))
    return tile_n


# --------------------------------------------------------------------------
# Wrapper
# --------------------------------------------------------------------------
def embed_fc(x, params, *, tile_n=None):
    """EmbedFC.forward: returns (x.size // input_dim, emb_dim) float32."""
    input_dim = params["input_dim"]
    emb_dim = params["emb_dim"]
    emb_p = params["emb_p"]
    w1_p, b1_p, w2_p, b2_p = (params["w1"], params["b1"],
                              params["w2"], params["b2"])

    total = x.size
    if total % input_dim != 0:
        raise ValueError(
            f"x.size={total} is not divisible by input_dim={input_dim}")
    n_rows = total // input_dim
    x2d = x.reshape(n_rows, input_dim)          # original dtype, no K padding

    vmem_cap = _vmem_capacity_bytes()
    tile_e = _pick_tile_e(emb_p, vmem_cap)
    n_j = emb_p // tile_e
    x_itemsize = jnp.dtype(x.dtype).itemsize
    if tile_n is None:
        tile_n = _pick_tile_n(n_rows, input_dim, emb_p, tile_e,
                              x_itemsize, vmem_cap)

    n_pad = _round_up(n_rows, tile_n)
    if n_pad != n_rows:                          # only the row remainder padded
        x2d = jnp.pad(x2d, ((0, n_pad - n_rows), (0, 0)))

    grid = (n_pad // tile_n, n_j)

    # Accurate VMEM need (no over-count), clamped below physical capacity.
    w2_bufs = 1 if n_j == 1 else 2
    need = (input_dim * emb_p * 2 + emb_p * 4                    # w1, b1 (1x)
            + w2_bufs * (emb_p * tile_e * 2 + tile_e * 4)        # w2, b2
            + 2 * tile_n * input_dim * x_itemsize                # x tiles
            + 2 * tile_n * tile_e * 4                            # out tiles
            + tile_n * emb_p * 2                                 # g scratch
            + 2 * tile_n * emb_p * 4)                            # f32 h/g
    vmem_limit = int(min(max(need + (6 << 20), 32 << 20),
                         vmem_cap - (12 << 20)))

    def _run(single_buffer):
        resident = ({"pipeline_mode": pl.Buffered(1)}
                    if single_buffer else {})
        w2_mode = resident if n_j == 1 else {}
        in_specs = [
            pl.BlockSpec((tile_n, input_dim), lambda i, j: (i, 0)),     # x
            pl.BlockSpec((input_dim, emb_p), lambda i, j: (0, 0),
                         **resident),                                   # w1
            pl.BlockSpec((1, emb_p), lambda i, j: (0, 0), **resident),  # b1
            pl.BlockSpec((emb_p, tile_e), lambda i, j: (0, j),
                         **w2_mode),                                    # w2
            pl.BlockSpec((1, tile_e), lambda i, j: (0, j), **w2_mode),  # b2
        ]
        out_specs = pl.BlockSpec((tile_n, tile_e), lambda i, j: (i, j))
        return pl.pallas_call(
            _embedfc_kernel,
            out_shape=jax.ShapeDtypeStruct((n_pad, emb_p), jnp.float32),
            grid_spec=pltpu.PrefetchScalarGridSpec(
                num_scalar_prefetch=0,
                grid=grid,
                in_specs=in_specs,
                out_specs=out_specs,
                scratch_shapes=[pltpu.VMEM((tile_n, emb_p), jnp.bfloat16)],
            ),
            compiler_params=pltpu.CompilerParams(
                dimension_semantics=("parallel", "arbitrary"),
                vmem_limit_bytes=vmem_limit,
            ),
        )(x2d, w1_p, b1_p, w2_p, b2_p)

    try:
        out = _run(True)          # single-buffered resident weights
    except Exception:
        out = _run(False)         # fallback: default double buffering

    if n_pad != n_rows or emb_p != emb_dim:
        out = out[:n_rows, :emb_dim]
    return out


# --------------------------------------------------------------------------
# Init / reference / demo
# --------------------------------------------------------------------------
def init_embedfc_params(key, input_dim, emb_dim):
    """torch.nn.Linear-style init; weights stored transposed (in, out)."""
    k1, k2, k3, k4 = jax.random.split(key, 4)
    bound1 = 1.0 / math.sqrt(input_dim)
    bound2 = 1.0 / math.sqrt(emb_dim)
    w1 = jax.random.uniform(k1, (input_dim, emb_dim), jnp.float32, -bound1, bound1)
    b1 = jax.random.uniform(k2, (emb_dim,), jnp.float32, -bound1, bound1)
    w2 = jax.random.uniform(k3, (emb_dim, emb_dim), jnp.float32, -bound2, bound2)
    b2 = jax.random.uniform(k4, (emb_dim,), jnp.float32, -bound2, bound2)
    return w1, b1, w2, b2


def _reference(x, w1, b1, w2, b2, input_dim):
    # Plain-JAX reference with matching bf16 operand rounding (f32 MXU acc).
    x2d = x.reshape(-1, input_dim)
    xb = x2d.astype(jnp.bfloat16).astype(jnp.float32)
    w1b = w1.astype(jnp.bfloat16).astype(jnp.float32)
    w2b = w2.astype(jnp.bfloat16).astype(jnp.float32)
    h = xb @ w1b + b1
    g = 0.5 * h * (1.0 + jax.lax.erf(h * jnp.float32(_INV_SQRT2)))
    gb = g.astype(jnp.bfloat16).astype(jnp.float32)
    return gb @ w2b + b2


if __name__ == "__main__":
    INPUT_DIM = 32
    EMB_DIM = 32

    key = jax.random.PRNGKey(0)
    kx, kx2, kp = jax.random.split(key, 3)

    w1, b1, w2, b2 = init_embedfc_params(kp, INPUT_DIM, EMB_DIM)
    params = prepare_embedfc_params(w1, b1, w2, b2)   # pad/cast once

    # Case 1: (2, 4, 8) -> view(-1, 32) -> 2 rows (exercises tiny-row padding).
    x = jax.random.normal(kx, (2, 4, 8), dtype=jnp.float32)
    out = embed_fc(x, params)
    jax.block_until_ready(out)
    assert out.shape == (x.size // INPUT_DIM, EMB_DIM)
    ref = _reference(x, w1, b1, w2, b2, INPUT_DIM)
    assert jnp.allclose(out, ref, atol=1e-2, rtol=1e-2), (
        float(jnp.max(jnp.abs(out - ref))))

    # Case 2: 100 rows (exercises a multi-step row grid + row remainder pad).
    x2 = jax.random.normal(kx2, (100, INPUT_DIM), dtype=jnp.float32)
    out2 = embed_fc(x2, params)
    jax.block_until_ready(out2)
    assert out2.shape == (100, EMB_DIM)
    ref2 = _reference(x2, w1, b1, w2, b2, INPUT_DIM)
    assert jnp.allclose(out2, ref2, atol=1e-2, rtol=1e-2), (
        float(jnp.max(jnp.abs(out2 - ref2))))

    print("KERNEL_OK")
</pallas_src>

<mosaic_0001>
module attributes {stable_mosaic.version = 11 : i64} {
  func.func @_embedfc_kernel(%arg0: i32, %arg1: i32, %arg2: memref<8x32xf32, #tpu.memory_space<vmem>>, %arg3: memref<32x128xbf16, #tpu.memory_space<vmem>>, %arg4: memref<1x128xf32, #tpu.memory_space<vmem>>, %arg5: memref<128x128xbf16, #tpu.memory_space<vmem>>, %arg6: memref<1x128xf32, #tpu.memory_space<vmem>>, %arg7: memref<8x128xf32, #tpu.memory_space<vmem>>, %arg8: memref<8x128xbf16, #tpu.memory_space<vmem>>) attributes {dimension_semantics = [#tpu.dimension_semantics<parallel>, #tpu.dimension_semantics<arbitrary>], iteration_bounds = array<i64: 1, 1>, scalar_prefetch = 0 : i64, scratch_operands = 1 : i64, tpu.core_type = #tpu.core_type<tc>, window_params = [{transform_indices = @transform_0, window_bounds = array<i64: 8, 32>}, {pipeline_mode = #tpu.pipeline_mode<synchronous>, transform_indices = @transform_1, window_bounds = array<i64: 32, 128>}, {pipeline_mode = #tpu.pipeline_mode<synchronous>, transform_indices = @transform_2, window_bounds = array<i64: 1, 128>}, {pipeline_mode = #tpu.pipeline_mode<synchronous>, transform_indices = @transform_3, window_bounds = array<i64: 128, 128>}, {pipeline_mode = #tpu.pipeline_mode<synchronous>, transform_indices = @transform_4, window_bounds = array<i64: 1, 128>}, {transform_indices = @transform_5, window_bounds = array<i64: 8, 128>}]} {
    %c0_i32 = arith.constant 0 : i32
    %0 = arith.cmpi eq, %arg1, %c0_i32 : i32
    %1 = arith.extui %0 : i1 to i32
    %c0_i32_0 = arith.constant 0 : i32
    %2 = arith.cmpi ne, %1, %c0_i32_0 : i32
    scf.if %2 {
      %c0_8 = arith.constant 0 : index
      %c0_9 = arith.constant 0 : index
      %10 = vector.load %arg2[%c0_8, %c0_9] : memref<8x32xf32, #tpu.memory_space<vmem>>, vector<8x32xf32>
      %11 = arith.truncf %10 : vector<8x32xf32> to vector<8x32xbf16>
      %c0_10 = arith.constant 0 : index
      %c0_11 = arith.constant 0 : index
      %12 = vector.load %arg3[%c0_10, %c0_11] : memref<32x128xbf16, #tpu.memory_space<vmem>>, vector<32x128xbf16>
      %cst_12 = arith.constant dense<0.000000e+00> : vector<8x128xf32>
      %13 = tpu.matmul %11, %12, %cst_12 {dimension_numbers = #tpu.dot_dimension_numbers<[1], [0], [0], [1], [0, 0, 1, 1], [], []>} : vector<8x32xbf16>, vector<32x128xbf16>, vector<8x128xf32> -> vector<8x128xf32>
      %c0_13 = arith.constant 0 : index
      %c0_14 = arith.constant 0 : index
      %14 = vector.load %arg4[%c0_13, %c0_14] : memref<1x128xf32, #tpu.memory_space<vmem>>, vector<1x128xf32>
      %15 = vector.broadcast %14 : vector<1x128xf32> to vector<8x128xf32>
      %16 = arith.addf %13, %15 : vector<8x128xf32>
      %cst_15 = arith.constant 5.000000e-01 : f32
      %17 = vector.broadcast %cst_15 : f32 to vector<8x128xf32>
      %18 = arith.mulf %17, %16 : vector<8x128xf32>
      %cst_16 = arith.constant 0.707106769 : f32
      %19 = vector.broadcast %cst_16 : f32 to vector<8x128xf32>
      %20 = arith.mulf %16, %19 : vector<8x128xf32>
      %21 = math.erf %20 : vector<8x128xf32>
      %cst_17 = arith.constant 1.000000e+00 : f32
      %22 = vector.broadcast %cst_17 : f32 to vector<8x128xf32>
      %23 = arith.addf %22, %21 : vector<8x128xf32>
      %24 = arith.mulf %18, %23 : vector<8x128xf32>
      %25 = arith.truncf %24 : vector<8x128xf32> to vector<8x128xbf16>
      %c0_18 = arith.constant 0 : index
      %c0_19 = arith.constant 0 : index
      %26 = vector.load %arg8[%c0_18, %c0_19] : memref<8x128xbf16, #tpu.memory_space<vmem>>, vector<8x128xbf16>
      tpu.vector_store %arg8[%c0_18, %c0_19], %25 {strides = array<i32>} : memref<8x128xbf16, #tpu.memory_space<vmem>>, vector<8x128xbf16>,
    } else {
    }
    %c0 = arith.constant 0 : index
    %c0_1 = arith.constant 0 : index
    %3 = vector.load %arg8[%c0, %c0_1] : memref<8x128xbf16, #tpu.memory_space<vmem>>, vector<8x128xbf16>
    %c0_2 = arith.constant 0 : index
    %c0_3 = arith.constant 0 : index
    %4 = vector.load %arg5[%c0_2, %c0_3] : memref<128x128xbf16, #tpu.memory_space<vmem>>, vector<128x128xbf16>
    %cst = arith.constant dense<0.000000e+00> : vector<8x128xf32>
    %5 = tpu.matmul %3, %4, %cst {dimension_numbers = #tpu.dot_dimension_numbers<[1], [0], [0], [1], [0, 0, 1, 1], [], []>} : vector<8x128xbf16>, vector<128x128xbf16>, vector<8x128xf32> -> vector<8x128xf32>
    %c0_4 = arith.constant 0 : index
    %c0_5 = arith.constant 0 : index
    %6 = vector.load %arg6[%c0_4, %c0_5] : memref<1x128xf32, #tpu.memory_space<vmem>>, vector<1x128xf32>
    %7 = vector.broadcast %6 : vector<1x128xf32> to vector<8x128xf32>
    %8 = arith.addf %5, %7 : vector<8x128xf32>
    %c0_6 = arith.constant 0 : index
    %c0_7 = arith.constant 0 : index
    %9 = vector.load %arg7[%c0_6, %c0_7] : memref<8x128xf32, #tpu.memory_space<vmem>>, vector<8x128xf32>
    tpu.vector_store %arg7[%c0_6, %c0_7], %8 {strides = array<i32>} : memref<8x128xf32, #tpu.memory_space<vmem>>, vector<8x128xf32>,
    return
  }
  func.func @transform_0(%arg0: i32, %arg1: i32) -> (i32, i32) {
    %c0_i32 = arith.constant 0 : i32
    %c0_i32_0 = arith.constant 0 : i32
    return %arg0, %c0_i32 : i32, i32
  }
  func.func @transform_1(%arg0: i32, %arg1: i32) -> (i32, i32) {
    %c0_i32 = arith.constant 0 : i32
    %c0_i32_0 = arith.constant 0 : i32
    %c0_i32_1 = arith.constant 0 : i32
    return %c0_i32, %c0_i32_0 : i32, i32
  }
  func.func @transform_2(%arg0: i32, %arg1: i32) -> (i32, i32) {
    %c0_i32 = arith.constant 0 : i32
    %c0_i32_0 = arith.constant 0 : i32
    %c0_i32_1 = arith.constant 0 : i32
    return %c0_i32, %c0_i32_0 : i32, i32
  }
  func.func @transform_3(%arg0: i32, %arg1: i32) -> (i32, i32) {
    %c0_i32 = arith.constant 0 : i32
    %c0_i32_0 = arith.constant 0 : i32
    return %c0_i32, %arg1 : i32, i32
  }
  func.func @transform_4(%arg0: i32, %arg1: i32) -> (i32, i32) {
    %c0_i32 = arith.constant 0 : i32
    %c0_i32_0 = arith.constant 0 : i32
    return %c0_i32, %arg1 : i32, i32
  }
  func.func @transform_5(%arg0: i32, %arg1: i32) -> (i32, i32) {
    %c0_i32 = arith.constant 0 : i32
    return %arg0, %arg1 : i32, i32
  }
}

module attributes {stable_mosaic.version = 11 : i64} {
  func.func @_embedfc_kernel(%arg0: i32, %arg1: i32, %arg2: memref<8x32xf32, #tpu.memory_space<vmem>>, %arg3: memref<32x128xbf16, #tpu.memory_space<vmem>>, %arg4: memref<1x128xf32, #tpu.memory_space<vmem>>, %arg5: memref<128x128xbf16, #tpu.memory_space<vmem>>, %arg6: memref<1x128xf32, #tpu.memory_space<vmem>>, %arg7: memref<8x128xf32, #tpu.memory_space<vmem>>, %arg8: memref<8x128xbf16, #tpu.memory_space<vmem>>) attributes {dimension_semantics = [#tpu.dimension_semantics<parallel>, #tpu.dimension_semantics<arbitrary>], iteration_bounds = array<i64: 1, 1>, scalar_prefetch = 0 : i64, scratch_operands = 1 : i64, tpu.core_type = #tpu.core_type<tc>, window_params = [{transform_indices = @transform_0, window_bounds = array<i64: 8, 32>}, {pipeline_mode = #tpu.pipeline_mode<synchronous>, transform_indices = @transform_1, window_bounds = array<i64: 32, 128>}, {pipeline_mode = #tpu.pipeline_mode<synchronous>, transform_indices = @transform_2, window_bounds = array<i64: 1, 128>}, {transform_indices = @transform_3, window_bounds = array<i64: 128, 128>}, {transform_indices = @transform_4, window_bounds = array<i64: 1, 128>}, {transform_indices = @transform_5, window_bounds = array<i64: 8, 128>}]} {
    %c0_i32 = arith.constant 0 : i32
    %0 = arith.cmpi eq, %arg1, %c0_i32 : i32
    %1 = arith.extui %0 : i1 to i32
    %c0_i32_0 = arith.constant 0 : i32
    %2 = arith.cmpi ne, %1, %c0_i32_0 : i32
    scf.if %2 {
      %c0_8 = arith.constant 0 : index
      %c0_9 = arith.constant 0 : index
      %10 = vector.load %arg2[%c0_8, %c0_9] : memref<8x32xf32, #tpu.memory_space<vmem>>, vector<8x32xf32>
      %11 = arith.truncf %10 : vector<8x32xf32> to vector<8x32xbf16>
      %c0_10 = arith.constant 0 : index
      %c0_11 = arith.constant 0 : index
      %12 = vector.load %arg3[%c0_10, %c0_11] : memref<32x128xbf16, #tpu.memory_space<vmem>>, vector<32x128xbf16>
      %cst_12 = arith.constant dense<0.000000e+00> : vector<8x128xf32>
      %13 = tpu.matmul %11, %12, %cst_12 {dimension_numbers = #tpu.dot_dimension_numbers<[1], [0], [0], [1], [0, 0, 1, 1], [], []>} : vector<8x32xbf16>, vector<32x128xbf16>, vector<8x128xf32> -> vector<8x128xf32>
      %c0_13 = arith.constant 0 : index
      %c0_14 = arith.constant 0 : index
      %14 = vector.load %arg4[%c0_13, %c0_14] : memref<1x128xf32, #tpu.memory_space<vmem>>, vector<1x128xf32>
      %15 = vector.broadcast %14 : vector<1x128xf32> to vector<8x128xf32>
      %16 = arith.addf %13, %15 : vector<8x128xf32>
      %cst_15 = arith.constant 5.000000e-01 : f32
      %17 = vector.broadcast %cst_15 : f32 to vector<8x128xf32>
      %18 = arith.mulf %17, %16 : vector<8x128xf32>
      %cst_16 = arith.constant 0.707106769 : f32
      %19 = vector.broadcast %cst_16 : f32 to vector<8x128xf32>
      %20 = arith.mulf %16, %19 : vector<8x128xf32>
      %21 = math.erf %20 : vector<8x128xf32>
      %cst_17 = arith.constant 1.000000e+00 : f32
      %22 = vector.broadcast %cst_17 : f32 to vector<8x128xf32>
      %23 = arith.addf %22, %21 : vector<8x128xf32>
      %24 = arith.mulf %18, %23 : vector<8x128xf32>
      %25 = arith.truncf %24 : vector<8x128xf32> to vector<8x128xbf16>
      %c0_18 = arith.constant 0 : index
      %c0_19 = arith.constant 0 : index
      %26 = vector.load %arg8[%c0_18, %c0_19] : memref<8x128xbf16, #tpu.memory_space<vmem>>, vector<8x128xbf16>
      tpu.vector_store %arg8[%c0_18, %c0_19], %25 {strides = array<i32>} : memref<8x128xbf16, #tpu.memory_space<vmem>>, vector<8x128xbf16>,
    } else {
    }
    %c0 = arith.constant 0 : index
    %c0_1 = arith.constant 0 : index
    %3 = vector.load %arg8[%c0, %c0_1] : memref<8x128xbf16, #tpu.memory_space<vmem>>, vector<8x128xbf16>
    %c0_2 = arith.constant 0 : index
    %c0_3 = arith.constant 0 : index
    %4 = vector.load %arg5[%c0_2, %c0_3] : memref<128x128xbf16, #tpu.memory_space<vmem>>, vector<128x128xbf16>
    %cst = arith.constant dense<0.000000e+00> : vector<8x128xf32>
    %5 = tpu.matmul %3, %4, %cst {dimension_numbers = #tpu.dot_dimension_numbers<[1], [0], [0], [1], [0, 0, 1, 1], [], []>} : vector<8x128xbf16>, vector<128x128xbf16>, vector<8x128xf32> -> vector<8x128xf32>
    %c0_4 = arith.constant 0 : index
    %c0_5 = arith.constant 0 : index
    %6 = vector.load %arg6[%c0_4, %c0_5] : memref<1x128xf32, #tpu.memory_space<vmem>>, vector<1x128xf32>
    %7 = vector.broadcast %6 : vector<1x128xf32> to vector<8x128xf32>
    %8 = arith.addf %5, %7 : vector<8x128xf32>
    %c0_6 = arith.constant 0 : index
    %c0_7 = arith.constant 0 : index
    %9 = vector.load %arg7[%c0_6, %c0_7] : memref<8x128xf32, #tpu.memory_space<vmem>>, vector<8x128xf32>
    tpu.vector_store %arg7[%c0_6, %c0_7], %8 {strides = array<i32>} : memref<8x128xf32, #tpu.memory_space<vmem>>, vector<8x128xf32>,
    return
  }
  func.func @transform_0(%arg0: i32, %arg1: i32) -> (i32, i32) {
    %c0_i32 = arith.constant 0 : i32
    %c0_i32_0 = arith.constant 0 : i32
    return %arg0, %c0_i32 : i32, i32
  }
  func.func @transform_1(%arg0: i32, %arg1: i32) -> (i32, i32) {
    %c0_i32 = arith.constant 0 : i32
    %c0_i32_0 = arith.constant 0 : i32
    %c0_i32_1 = arith.constant 0 : i32
    return %c0_i32, %c0_i32_0 : i32, i32
  }
  func.func @transform_2(%arg0: i32, %arg1: i32) -> (i32, i32) {
    %c0_i32 = arith.constant 0 : i32
    %c0_i32_0 = arith.constant 0 : i32
    %c0_i32_1 = arith.constant 0 : i32
    return %c0_i32, %c0_i32_0 : i32, i32
  }
  func.func @transform_3(%arg0: i32, %arg1: i32) -> (i32, i32) {
    %c0_i32 = arith.constant 0 : i32
    %c0_i32_0 = arith.constant 0 : i32
    return %c0_i32, %arg1 : i32, i32
  }
  func.func @transform_4(%arg0: i32, %arg1: i32) -> (i32, i32) {
    %c0_i32 = arith.constant 0 : i32
    %c0_i32_0 = arith.constant 0 : i32
    return %c0_i32, %arg1 : i32, i32
  }
  func.func @transform_5(%arg0: i32, %arg1: i32) -> (i32, i32) {
    %c0_i32 = arith.constant 0 : i32
    return %arg0, %arg1 : i32, i32
  }
}

</mosaic_0001>

<bundles_post_ra>
// kernel: tpu_custom_call.1
= control target key start
LH: loop header
LB: loop body
LE: loop exit
PB: predicated region body
PF: predicated region fallthrough
CT: control target
= control target key end

     0   :  { %10 = vsyncpa [#allocation4], 0  ;;  %s535_s0 = inlined_call_operand.hbm [shape: f32[8,32], index: 0, kind: input, shape index: {}]   ;;  %s536_s1 = inlined_call_operand.hbm [shape: bf16[32,128], index: 1, kind: input, shape index: {}]   ;;  %s537_s2 = inlined_call_operand.vmem [shape: f32[1,128], index: 2, kind: input, shape index: {}]   ;;  %s538_s3 = inlined_call_operand.hbm [shape: bf16[128,128], index: 3, kind: input, shape index: {}]   ;;  %s539_s4 = inlined_call_operand.vmem [shape: f32[1,128], index: 4, kind: input, shape index: {}]   ;;  %s540_s5 = inlined_call_operand.hbm [shape: f32[8,128], index: 5, kind: output, shape index: {}]  }
   0x1   :  { %11 = vsyncpa [#allocation7], 0 }
   0x2   :  { %12 = vsyncpa [#allocation5], 0  ;;  %s437_s18 = smov [#allocation6]   ;;  %s343_s22 = scalar_lea.hbm %s536_s1, 256 }
   0x3   :  { %s28_s19 = sshll.u32 %s437_s18, 4  ;;  %p344_p0 = scmp.ne.s32.totalorder %s536_s1, %s343_s22  ;;  %s29_s19 = int_to_ptr.vmem [resolvable:$true] %s28_s19 }
   0x4   :  { %p347_p1 = scmp.lt.u32.totalorder %s343_s22, %s536_s1 }
   0x6   :  { %p349_p2 = pnand %p347_p1, %p344_p0 }
   0x8   :  { %352 = shalt.err (!%p349_p2)
}
   0x9   :  { %s353_s27 = scalar_lea.vmem %s29_s19, 256  ;;  %p358_p4 = scmp.lt.s32.totalorder %s29_s19, %s29_s19 }
   0xa   :  { %p354_p3 = scmp.ne.s32.totalorder %s29_s19, %s353_s27  ;;  %p359_p5 = scmp.lt.s32.totalorder %s353_s27, %s353_s27 }
   0xc   :  { %p360_p6 = por %p359_p5, %p358_p4 }
   0xe   :  { %p361_p7 = pnand %p360_p6, %p354_p3 }
  0x10   :  { %364 = shalt.err (!%p361_p7)
}
  0x11   :  { %s438_s28 = smov 64   ;;  %s439_s29 = smov 4  }
  0x12   :  { %34 = dma.hbm_to_vmem [thread:$0]  %s536_s1, 256, %s29_s19, [#allocation7], %s438_s28, %s438_s28, %s439_s29  }
  0x13   :  { %s440_s7 = smov [#allocation3]   ;;  %s441_s9 = smov [#allocation8]  }
  0x14   :  { %s19_s8 = sshll.u32 %s440_s7, 4  ;;  %s42_s10 = sshll.u32 %s441_s9, 4  ;;  %s20_s8 = int_to_ptr.vmem [resolvable:$true] %s19_s8  ;;  %s43_s10 = int_to_ptr.vmem [resolvable:$true] %s42_s10 }
  0x15   :  { %s365_s13 = scalar_lea.hbm %s535_s0, 128 }
  0x16   :  { %p366_p8 = scmp.ne.s32.totalorder %s535_s0, %s365_s13  ;;  %p369_p9 = scmp.lt.u32.totalorder %s365_s13, %s535_s0 }
  0x18   :  { %p371_p10 = pnand %p369_p9, %p366_p8 }
  0x1a   :  { %374 = shalt.err (!%p371_p10)
}
  0x1b   :  { %s375_s1 = scalar_lea.vmem %s20_s8, 128  ;;  %p380_p12 = scmp.lt.s32.totalorder %s20_s8, %s20_s8 }
  0x1c   :  { %p376_p11 = scmp.ne.s32.totalorder %s20_s8, %s375_s1  ;;  %p381_p13 = scmp.lt.s32.totalorder %s375_s1, %s375_s1 }
  0x1e   :  { %p382_p0 = por %p381_p13, %p380_p12 }
  0x20   :  { %p383_p1 = pnand %p382_p0, %p376_p11 }
  0x22   :  { %386 = shalt.err (!%p383_p1)
}
  0x23   :  { %22 = dma.hbm_to_vmem [thread:$0]  %s535_s0, 128, %s20_s8, [#allocation4]  }
  0x24   :  { %s387_s22 = scalar_lea.hbm %s538_s3, 1024 }
  0x25   :  { %p388_p2 = scmp.ne.s32.totalorder %s538_s3, %s387_s22  ;;  %p391_p3 = scmp.lt.u32.totalorder %s387_s22, %s538_s3 }
  0x27   :  { %p393_p4 = pnand %p391_p3, %p388_p2 }
  0x29   :  { %396 = shalt.err (!%p393_p4)
}
  0x2a   :  { %s397_s27 = scalar_lea.vmem %s43_s10, 1024  ;;  %p402_p6 = scmp.lt.s32.totalorder %s43_s10, %s43_s10 }
  0x2b   :  { %p398_p5 = scmp.ne.s32.totalorder %s43_s10, %s397_s27  ;;  %p403_p7 = scmp.lt.s32.totalorder %s397_s27, %s397_s27 }
  0x2d   :  { %p404_p8 = por %p403_p7, %p402_p6 }
  0x2f   :  { %p405_p9 = pnand %p404_p8, %p398_p5 }
  0x31   :  { %408 = shalt.err (!%p405_p9)
}
  0x32   :  { %48 = dma.hbm_to_vmem [thread:$0]  %s538_s3, 1024, %s43_s10, [#allocation7], %s438_s28, %s438_s28, %s439_s29  }
  0x33   :  { %431 = dma.done.wait [#allocation4], 128  }
  0x34   :  { %432 = vsyncadd [#allocation4], 4294967168 }
  0x35   :  { %433 = dma.done.wait [#allocation7], 1280  }
  0x36   :  { %434 = vsyncadd [#allocation7], 4294966016  ;;  %v442_v0 = vmov 0.0   ;;  %vm443_vm0 = vmmov 0   ;;  %v331_v1 = vld [vmem:[#allocation6] sm:$0xff]   ;;  %v332_v2 = vld [vmem:[#allocation6 + $0x8] sm:$0xff]  }
  0x37   :  { %295 = vmatprep.subr.bf16.mxu0 %v442_v0  ;;  %299 = vmatprep.mubr.msk.bf16.mxu0 %vm443_vm0, %v442_v0  ;;  %v65_v3 = vld [vmem:[#allocation3] sm:$0xff]  ;;  %vm90_vm1 = vcmask 261120   ;;  %v333_v4 = vld [vmem:[#allocation8] sm:$0xff]   ;;  %v335_v7 = vld [vmem:[#allocation8 + $0x10] sm:$0xff]  }
  0x38   :  { %303 = vmatprep.subr.bf16.mxu1 %v442_v0  ;;  %319 = vmatprep.mubr.msk.bf16.mxu1 %vm443_vm0, %v442_v0  ;;  %v66_v5 = vpack.c.bf16 %v65_v3, %v65_v3  ;;  %v334_v6 = vld [vmem:[#allocation8 + $0x8] sm:$0xff]   ;;  %v336_v8 = vld [vmem:[#allocation8 + $0x18] sm:$0xff]   ;;  %v337_v9 = vld [vmem:[#allocation8 + $0x20] sm:$0xff]  }
  0x39   :  { %296 = vmatpush3.bf16.msra.mxu0 %v331_v1  ;;  %304 = vmatpush3.bf16.msra.mxu1 %v333_v4  ;;  %v338_v10 = vld [vmem:[#allocation8 + $0x28] sm:$0xff]   ;;  %v339_v11 = vld [vmem:[#allocation8 + $0x30] sm:$0xff]   ;;  %v340_v12 = vld [vmem:[#allocation8 + $0x38] sm:$0xff]  }
  0x3a   :  { %297 = vmatprep.subr.bf16.mxu0 %v442_v0  ;;  %305 = vmatprep.subr.bf16.mxu1 %v442_v0  ;;  %v270_v13 = vld [vmem:[%s537_s2] ss:$0 sm:$0xff]  ;;  %s444_s2 = smov [#allocation9]  }
  0x3b   :  { %v274_v26 = vld [vmem:[%s539_s4] ss:$0 sm:$0xff]  ;;  %s260_s7 = sshll.u32 %s444_s2, 4  ;;  %s261_s7 = int_to_ptr.vmem [resolvable:$true] %s260_s7 }
  0x3c   :  { %s409_s8 = scalar_lea.vmem %s261_s7, 128  ;;  %p414_p11 = scmp.lt.s32.totalorder %s261_s7, %s261_s7 }
  0x3d   :  { %298 = vmatpush3.bf16.msra.mxu0 %v332_v2  ;;  %306 = vmatpush3.bf16.msra.mxu1 %v334_v6  ;;  %p410_p10 = scmp.ne.s32.totalorder %s261_s7, %s409_s8  ;;  %p415_p12 = scmp.lt.s32.totalorder %s409_s8, %s409_s8 }
  0x3e   :  { %307 = vmatprep.subr.bf16.mxu1 %v442_v0 }
  0x3f   :  { %p416_p13 = por %p415_p12, %p414_p11 }
  0x40   :  { %300 = vmatmul.mubr.msk.bf16.vlgmr.msra.gmra.mrb[0].mxu0 %vm90_vm1, %v66_v5 }
  0x41   :  { %308 = vmatpush3.bf16.msra.mxu1 %v335_v7  ;;  %p417_p0 = pnand %p416_p13, %p410_p10 }
  0x42   :  { %309 = vmatprep.subr.bf16.mxu1 %v442_v0 }
  0x45   :  { %310 = vmatpush3.bf16.msra.mxu1 %v336_v8 }
  0x46   :  { %311 = vmatprep.subr.bf16.mxu1 %v442_v0 }
  0x49   :  { %312 = vmatpush3.bf16.msra.mxu1 %v337_v9 }
  0x4a   :  { %313 = vmatprep.subr.bf16.mxu1 %v442_v0 }
  0x4d   :  { %314 = vmatpush3.bf16.msra.mxu1 %v338_v10 }
  0x4e   :  { %315 = vmatprep.subr.bf16.mxu1 %v442_v0 }
  0x51   :  { %316 = vmatpush3.bf16.msra.mxu1 %v339_v11 }
  0x52   :  { %317 = vmatprep.subr.bf16.mxu1 %v442_v0 }
  0x55   :  { %318 = vmatpush3.bf16.msra.mxu1 %v340_v12 }
 0x113   :  { %v128_v14 = vpop.f32.mrb[0].mxu0 }
 0x114   :  { %v129_v15 = vadd.f32 %v270_v13, %v128_v14  ;;  %v301_v16 = vpop.f32.mrb[1].mxu0 }
 0x115   :  { %v131_v17 = vpop.f32.mrb[2].mxu0 }
 0x116   :  { %v135_v18 = vmul.f32 0.70710677, %v129_v15  ;;  %v302_v19 = vpop.f32.mrb[3].mxu0  ;;  %v134_v21 = vmul.f32 0.5, %v129_v15 }
 0x118   :  { %341 = verf.f32 %v135_v18 }
 0x122   :  { %v342_v20 = vpop.eup %341 }
 0x123   :  { %v137_v22 = vadd.f32 1.0, %v342_v20 }
 0x125   :  { %v138_v23 = vmul.f32 %v137_v22, %v134_v21 }
 0x127   :  { %v139_v24 = vpack.c.bf16 %v138_v23, %v138_v23 }
 0x129   :  { %140 = vst [vmem:[#allocation2] sm:$0xf] %v139_v24 }
 0x130   :  { %v141_v25 = vld [vmem:[#allocation2] sm:$0xf] }
 0x131   :  { %320 = vmatmul.mubr.bf16.vlgmr.msra.gmra.mrb[0].mxu1 %v141_v25 }
 0x204   :  { %v247_v27 = vpop.f32.mrb[0].mxu1 }
 0x205   :  { %v248_v28 = vadd.f32 %v274_v26, %v247_v27  ;;  %v321_v29 = vpop.f32.mrb[1].mxu1 }
 0x206   :  { %v250_v30 = vpop.f32.mrb[2].mxu1 }
 0x207   :  { %253 = vst [vmem:[#allocation9] sm:$0xff] %v248_v28  ;;  %v322_v31 = vpop.f32.mrb[3].mxu1 }
 0x208   :  { %420 = shalt.err (!%p417_p0)
}
 0x209   :  { %s421_s4 = scalar_lea.hbm %s540_s5, 128 }
 0x20a   :  { %p422_p1 = scmp.ne.s32.totalorder %s540_s5, %s421_s4  ;;  %p425_p2 = scmp.lt.u32.totalorder %s421_s4, %s540_s5 }
 0x20c   :  { %p427_p3 = pnand %p425_p2, %p422_p1 }
 0x20e   :  { %430 = shalt.err (!%p427_p3)
}
 0x20f   :  { %263 = dma.vmem_to_hbm [thread:$0]  %s261_s7, 128, %s540_s5, [#allocation5]  }
 0x210   :  { %435 = dma.done.wait [#allocation5], 128  }
 0x211   :  { %436 = vsyncadd [#allocation5], 4294967168 }
 0x212   :  { %267 = vsyncpa [#allocation4], 1 }
 0x213   :  { %268 = vsyncpa [#allocation7], 1 }
 0x214   :  { %269 = vsyncpa [#allocation5], 1 }

// kernel: tpu_custom_call.1
= control target key start
LH: loop header
LB: loop body
LE: loop exit
PB: predicated region body
PF: predicated region fallthrough
CT: control target
= control target key end

     0   :  { %10 = vsyncpa [#allocation4], 0  ;;  %s535_s0 = inlined_call_operand.hbm [shape: f32[8,32], index: 0, kind: input, shape index: {}]   ;;  %s536_s1 = inlined_call_operand.hbm [shape: bf16[32,128], index: 1, kind: input, shape index: {}]   ;;  %s537_s2 = inlined_call_operand.vmem [shape: f32[1,128], index: 2, kind: input, shape index: {}]   ;;  %s538_s3 = inlined_call_operand.hbm [shape: bf16[128,128], index: 3, kind: input, shape index: {}]   ;;  %s539_s4 = inlined_call_operand.vmem [shape: f32[1,128], index: 4, kind: input, shape index: {}]   ;;  %s540_s5 = inlined_call_operand.hbm [shape: f32[8,128], index: 5, kind: output, shape index: {}]  }
   0x1   :  { %11 = vsyncpa [#allocation7], 0 }
   0x2   :  { %12 = vsyncpa [#allocation5], 0  ;;  %s437_s18 = smov [#allocation6]   ;;  %s343_s22 = scalar_lea.hbm %s536_s1, 256 }
   0x3   :  { %s28_s19 = sshll.u32 %s437_s18, 4  ;;  %p344_p0 = scmp.ne.s32.totalorder %s536_s1, %s343_s22  ;;  %s29_s19 = int_to_ptr.vmem [resolvable:$true] %s28_s19 }
   0x4   :  { %p347_p1 = scmp.lt.u32.totalorder %s343_s22, %s536_s1 }
   0x6   :  { %p349_p2 = pnand %p347_p1, %p344_p0 }
   0x8   :  { %352 = shalt.err (!%p349_p2)
}
   0x9   :  { %s353_s27 = scalar_lea.vmem %s29_s19, 256  ;;  %p358_p4 = scmp.lt.s32.totalorder %s29_s19, %s29_s19 }
   0xa   :  { %p354_p3 = scmp.ne.s32.totalorder %s29_s19, %s353_s27  ;;  %p359_p5 = scmp.lt.s32.totalorder %s353_s27, %s353_s27 }
   0xc   :  { %p360_p6 = por %p359_p5, %p358_p4 }
   0xe   :  { %p361_p7 = pnand %p360_p6, %p354_p3 }
  0x10   :  { %364 = shalt.err (!%p361_p7)
}
  0x11   :  { %s438_s28 = smov 64   ;;  %s439_s29 = smov 4  }
  0x12   :  { %34 = dma.hbm_to_vmem [thread:$0]  %s536_s1, 256, %s29_s19, [#allocation7], %s438_s28, %s438_s28, %s439_s29  }
  0x13   :  { %s440_s7 = smov [#allocation3]   ;;  %s441_s9 = smov [#allocation8]  }
  0x14   :  { %s19_s8 = sshll.u32 %s440_s7, 4  ;;  %s42_s10 = sshll.u32 %s441_s9, 4  ;;  %s20_s8 = int_to_ptr.vmem [resolvable:$true] %s19_s8  ;;  %s43_s10 = int_to_ptr.vmem [resolvable:$true] %s42_s10 }
  0x15   :  { %s365_s13 = scalar_lea.hbm %s535_s0, 128 }
  0x16   :  { %p366_p8 = scmp.ne.s32.totalorder %s535_s0, %s365_s13  ;;  %p369_p9 = scmp.lt.u32.totalorder %s365_s13, %s535_s0 }
  0x18   :  { %p371_p10 = pnand %p369_p9, %p366_p8 }
  0x1a   :  { %374 = shalt.err (!%p371_p10)
}
  0x1b   :  { %s375_s1 = scalar_lea.vmem %s20_s8, 128  ;;  %p380_p12 = scmp.lt.s32.totalorder %s20_s8, %s20_s8 }
  0x1c   :  { %p376_p11 = scmp.ne.s32.totalorder %s20_s8, %s375_s1  ;;  %p381_p13 = scmp.lt.s32.totalorder %s375_s1, %s375_s1 }
  0x1e   :  { %p382_p0 = por %p381_p13, %p380_p12 }
  0x20   :  { %p383_p1 = pnand %p382_p0, %p376_p11 }
  0x22   :  { %386 = shalt.err (!%p383_p1)
}
  0x23   :  { %22 = dma.hbm_to_vmem [thread:$0]  %s535_s0, 128, %s20_s8, [#allocation4]  }
  0x24   :  { %s387_s22 = scalar_lea.hbm %s538_s3, 1024 }
  0x25   :  { %p388_p2 = scmp.ne.s32.totalorder %s538_s3, %s387_s22  ;;  %p391_p3 = scmp.lt.u32.totalorder %s387_s22, %s538_s3 }
  0x27   :  { %p393_p4 = pnand %p391_p3, %p388_p2 }
  0x29   :  { %396 = shalt.err (!%p393_p4)
}
  0x2a   :  { %s397_s27 = scalar_lea.vmem %s43_s10, 1024  ;;  %p402_p6 = scmp.lt.s32.totalorder %s43_s10, %s43_s10 }
  0x2b   :  { %p398_p5 = scmp.ne.s32.totalorder %s43_s10, %s397_s27  ;;  %p403_p7 = scmp.lt.s32.totalorder %s397_s27, %s397_s27 }
  0x2d   :  { %p404_p8 = por %p403_p7, %p402_p6 }
  0x2f   :  { %p405_p9 = pnand %p404_p8, %p398_p5 }
  0x31   :  { %408 = shalt.err (!%p405_p9)
}
  0x32   :  { %48 = dma.hbm_to_vmem [thread:$0]  %s538_s3, 1024, %s43_s10, [#allocation7], %s438_s28, %s438_s28, %s439_s29  }
  0x33   :  { %431 = dma.done.wait [#allocation4], 128  }
  0x34   :  { %432 = vsyncadd [#allocation4], 4294967168 }
  0x35   :  { %433 = dma.done.wait [#allocation7], 1280  }
  0x36   :  { %434 = vsyncadd [#allocation7], 4294966016  ;;  %v442_v0 = vmov 0.0   ;;  %vm443_vm0 = vmmov 0   ;;  %v331_v1 = vld [vmem:[#allocation6] sm:$0xff]   ;;  %v332_v2 = vld [vmem:[#allocation6 + $0x8] sm:$0xff]  }
  0x37   :  { %295 = vmatprep.subr.bf16.mxu0 %v442_v0  ;;  %299 = vmatprep.mubr.msk.bf16.mxu0 %vm443_vm0, %v442_v0  ;;  %v65_v3 = vld [vmem:[#allocation3] sm:$0xff]  ;;  %vm90_vm1 = vcmask 261120   ;;  %v333_v4 = vld [vmem:[#allocation8] sm:$0xff]   ;;  %v335_v7 = vld [vmem:[#allocation8 + $0x10] sm:$0xff]  }
  0x38   :  { %303 = vmatprep.subr.bf16.mxu1 %v442_v0  ;;  %319 = vmatprep.mubr.msk.bf16.mxu1 %vm443_vm0, %v442_v0  ;;  %v66_v5 = vpack.c.bf16 %v65_v3, %v65_v3  ;;  %v334_v6 = vld [vmem:[#allocation8 + $0x8] sm:$0xff]   ;;  %v336_v8 = vld [vmem:[#allocation8 + $0x18] sm:$0xff]   ;;  %v337_v9 = vld [vmem:[#allocation8 + $0x20] sm:$0xff]  }
  0x39   :  { %296 = vmatpush3.bf16.msra.mxu0 %v331_v1  ;;  %304 = vmatpush3.bf16.msra.mxu1 %v333_v4  ;;  %v338_v10 = vld [vmem:[#allocation8 + $0x28] sm:$0xff]   ;;  %v339_v11 = vld [vmem:[#allocation8 + $0x30] sm:$0xff]   ;;  %v340_v12 = vld [vmem:[#allocation8 + $0x38] sm:$0xff]  }
  0x3a   :  { %297 = vmatprep.subr.bf16.mxu0 %v442_v0  ;;  %305 = vmatprep.subr.bf16.mxu1 %v442_v0  ;;  %v270_v13 = vld [vmem:[%s537_s2] ss:$0 sm:$0xff]  ;;  %s444_s2 = smov [#allocation9]  }
  0x3b   :  { %v274_v26 = vld [vmem:[%s539_s4] ss:$0 sm:$0xff]  ;;  %s260_s7 = sshll.u32 %s444_s2, 4  ;;  %s261_s7 = int_to_ptr.vmem [resolvable:$true] %s260_s7 }
  0x3c   :  { %s409_s8 = scalar_lea.vmem %s261_s7, 128  ;;  %p414_p11 = scmp.lt.s32.totalorder %s261_s7, %s261_s7 }
  0x3d   :  { %298 = vmatpush3.bf16.msra.mxu0 %v332_v2  ;;  %306 = vmatpush3.bf16.msra.mxu1 %v334_v6  ;;  %p410_p10 = scmp.ne.s32.totalorder %s261_s7, %s409_s8  ;;  %p415_p12 = scmp.lt.s32.totalorder %s409_s8, %s409_s8 }
  0x3e   :  { %307 = vmatprep.subr.bf16.mxu1 %v442_v0 }
  0x3f   :  { %p416_p13 = por %p415_p12, %p414_p11 }
  0x40   :  { %300 = vmatmul.mubr.msk.bf16.vlgmr.msra.gmra.mrb[0].mxu0 %vm90_vm1, %v66_v5 }
  0x41   :  { %308 = vmatpush3.bf16.msra.mxu1 %v335_v7  ;;  %p417_p0 = pnand %p416_p13, %p410_p10 }
  0x42   :  { %309 = vmatprep.subr.bf16.mxu1 %v442_v0 }
  0x45   :  { %310 = vmatpush3.bf16.msra.mxu1 %v336_v8 }
  0x46   :  { %311 = vmatprep.subr.bf16.mxu1 %v442_v0 }
  0x49   :  { %312 = vmatpush3.bf16.msra.mxu1 %v337_v9 }
  0x4a   :  { %313 = vmatprep.subr.bf16.mxu1 %v442_v0 }
  0x4d   :  { %314 = vmatpush3.bf16.msra.mxu1 %v338_v10 }
  0x4e   :  { %315 = vmatprep.subr.bf16.mxu1 %v442_v0 }
  0x51   :  { %316 = vmatpush3.bf16.msra.mxu1 %v339_v11 }
  0x52   :  { %317 = vmatprep.subr.bf16.mxu1 %v442_v0 }
  0x55   :  { %318 = vmatpush3.bf16.msra.mxu1 %v340_v12 }
 0x113   :  { %v128_v14 = vpop.f32.mrb[0].mxu0 }
 0x114   :  { %v129_v15 = vadd.f32 %v270_v13, %v128_v14  ;;  %v301_v16 = vpop.f32.mrb[1].mxu0 }
 0x115   :  { %v131_v17 = vpop.f32.mrb[2].mxu0 }
 0x116   :  { %v135_v18 = vmul.f32 0.70710677, %v129_v15  ;;  %v302_v19 = vpop.f32.mrb[3].mxu0  ;;  %v134_v21 = vmul.f32 0.5, %v129_v15 }
 0x118   :  { %341 = verf.f32 %v135_v18 }
 0x122   :  { %v342_v20 = vpop.eup %341 }
 0x123   :  { %v137_v22 = vadd.f32 1.0, %v342_v20 }
 0x125   :  { %v138_v23 = vmul.f32 %v137_v22, %v134_v21 }
 0x127   :  { %v139_v24 = vpack.c.bf16 %v138_v23, %v138_v23 }
 0x129   :  { %140 = vst [vmem:[#allocation2] sm:$0xf] %v139_v24 }
 0x130   :  { %v141_v25 = vld [vmem:[#allocation2] sm:$0xf] }
 0x131   :  { %320 = vmatmul.mubr.bf16.vlgmr.msra.gmra.mrb[0].mxu1 %v141_v25 }
 0x204   :  { %v247_v27 = vpop.f32.mrb[0].mxu1 }
 0x205   :  { %v248_v28 = vadd.f32 %v274_v26, %v247_v27  ;;  %v321_v29 = vpop.f32.mrb[1].mxu1 }
 0x206   :  { %v250_v30 = vpop.f32.mrb[2].mxu1 }
 0x207   :  { %253 = vst [vmem:[#allocation9] sm:$0xff] %v248_v28  ;;  %v322_v31 = vpop.f32.mrb[3].mxu1 }
 0x208   :  { %420 = shalt.err (!%p417_p0)
}
 0x209   :  { %s421_s4 = scalar_lea.hbm %s540_s5, 128 }
 0x20a   :  { %p422_p1 = scmp.ne.s32.totalorder %s540_s5, %s421_s4  ;;  %p425_p2 = scmp.lt.u32.totalorder %s421_s4, %s540_s5 }
 0x20c   :  { %p427_p3 = pnand %p425_p2, %p422_p1 }
 0x20e   :  { %430 = shalt.err (!%p427_p3)
}
 0x20f   :  { %263 = dma.vmem_to_hbm [thread:$0]  %s261_s7, 128, %s540_s5, [#allocation5]  }
 0x210   :  { %435 = dma.done.wait [#allocation5], 128  }
 0x211   :  { %436 = vsyncadd [#allocation5], 4294967168 }
 0x212   :  { %267 = vsyncpa [#allocation4], 1 }
 0x213   :  { %268 = vsyncpa [#allocation7], 1 }
 0x214   :  { %269 = vsyncpa [#allocation5], 1 }

</bundles_post_ra>
